<compile_context>
chip_gen: v5e
topology: v5e:2x2
jax: 0.10.0
libtpu: 0.0.40
codegen_flags: <defaults>
</compile_context>

<pallas_src>
import jax
import jax.numpy as jnp
from jax.experimental import pallas as pl
from jax.experimental.pallas import tpu as pltpu


def _round_up(a: int, b: int) -> int:
    return ((a + b - 1) // b) * b


def _choose_tile(dim: int, desired: int, align: int) -> int:
    """Pick a tile size: full extent if it fits in one tile (exempt from the
    (8,128) alignment rule), otherwise the largest aligned tile <= desired."""
    if dim <= desired:
        return dim
    return max(align, (desired // align) * align)


# --------------------------------------------------------------------------- #
# Kernel
# --------------------------------------------------------------------------- #
def lora_kernel(x_ref, wa_ref, wb_ref, o_ref, t_ref):
    # The (x @ wa) intermediate depends only on the row tile `i`; compute it
    # once (at the first out_features tile) into bf16 scratch and reuse it for
    # every `j`.  Requires N to be the innermost "arbitrary" grid axis.
    @pl.when(pl.program_id(1) == 0)
    def _():
        x = x_ref[...].astype(wa_ref.dtype)          # cast in-kernel (VPU), no HBM copy
        t_ref[...] = jnp.dot(
            x, wa_ref[...], preferred_element_type=jnp.float32
        ).astype(t_ref.dtype)

    o_ref[...] = jnp.dot(
        t_ref[...], wb_ref[...], preferred_element_type=jnp.float32
    ).astype(o_ref.dtype)


# --------------------------------------------------------------------------- #
# Wrappers
# --------------------------------------------------------------------------- #
def prepare_lora_weights(a_weight, b_weight, *, compute_dtype=jnp.bfloat16,
                         rank_align=8):
    """One-time weight preparation (call OUTSIDE the per-step hot path).

    a_weight: (rank, in_features)   == nn.Linear A.weight
    b_weight: (out_features, rank)  == nn.Linear B.weight
    Returns wa (in_features, rank_pad), wb (rank_pad, out_features) in
    compute_dtype, with rank zero-padded to a sublane multiple (contributes 0).
    """
    rank, _ = a_weight.shape
    r_pad = _round_up(max(rank, 1), rank_align)
    wa = a_weight.T.astype(compute_dtype)
    wb = b_weight.T.astype(compute_dtype)
    if r_pad != rank:
        wa = jnp.pad(wa, ((0, 0), (0, r_pad - rank)))
        wb = jnp.pad(wb, ((0, r_pad - rank), (0, 0)))
    return wa, wb


def lora_forward(x, wa, wb, *, tm=512, tn=2048, out_dtype=None):
    """LoRA forward: y = (x @ wa) @ wb.

    x:  (..., in_features)  — any dtype (cast to wa.dtype inside the kernel)
    wa: (in_features, rank) — prepared weight (A.weight.T), compute dtype
    wb: (rank, out_features)— prepared weight (B.weight.T), compute dtype
    Returns (..., out_features) in out_dtype (default: x.dtype).
    """
    orig_shape = x.shape
    K = orig_shape[-1]
    x2 = x.reshape(-1, K)                 # merge leading dims (no-copy reshape)
    M = x2.shape[0]
    K2, R = wa.shape
    R2, N = wb.shape
    assert K == K2 and R == R2, "shape mismatch between x / wa / wb"

    out_dtype = x.dtype if out_dtype is None else out_dtype
    x_sz = jnp.dtype(x.dtype).itemsize
    w_sz = jnp.dtype(wa.dtype).itemsize
    o_sz = jnp.dtype(out_dtype).itemsize
    t_sz = w_sz                                      # scratch in compute dtype

    # --- generation-aware VMEM budget (v7x: 64 MiB phys, v5e/v6e: 128 MiB) ---
    try:
        phys_vmem = int(pltpu.get_tpu_info().vmem_capacity_bytes)
    except Exception:
        phys_vmem = 64 * 1024 * 1024                 # conservative fallback
    vmem_limit = max(32 * 1024 * 1024,
                     min(phys_vmem - 8 * 1024 * 1024, int(phys_vmem * 0.85)))

    # --- tile selection -------------------------------------------------------
    # Row tile: sublane-aligned, capped so the double-buffered (tm, K) x block
    # takes at most ~1/3 of the budget.
    tm_cap = max(8, ((vmem_limit // 3) // (2 * K * x_sz)) // 8 * 8)
    tm = _choose_tile(M, min(tm, tm_cap), 8)
    # v7x megacore: ensure >= 2 row tiles so the "parallel" axis shards across
    # both TensorCores (harmless single extra step on 1-TC chips).
    if M > 8 and pl.cdiv(M, tm) < 2:
        tm = max(8, _round_up(pl.cdiv(M, 2), 8))

    # Column tile: large & lane-dense; cap so Wb tiles + output tiles (plus the
    # resident Wa, the x blocks and the scratch) fit the budget with headroom.
    fixed = (2 * tm * K * x_sz            # x tile (double-buffered)
             + 2 * K * R * w_sz           # Wa (resident; conservative x2)
             + tm * max(R, 128) * t_sz    # bf16 intermediate scratch (lane pad)
             + (4 << 20))                 # headroom
    per_tn = 2 * R * w_sz + 2 * tm * o_sz
    if vmem_limit > fixed:
        tn_cap = max(128, ((vmem_limit - fixed) // per_tn) // 128 * 128)
    else:
        tn_cap = 128
    tn = _choose_tile(N, min(tn, tn_cap), 128)

    grid = (pl.cdiv(M, tm), pl.cdiv(N, tn))

    cost = pl.CostEstimate(
        flops=2 * M * K * R + 2 * M * R * N,
        transcendentals=0,
        bytes_accessed=M * K * x_sz + K * R * w_sz + R * N * w_sz + M * N * o_sz,
    )

    y = pl.pallas_call(
        lora_kernel,
        out_shape=jax.ShapeDtypeStruct((M, N), out_dtype),
        grid_spec=pltpu.PrefetchScalarGridSpec(
            num_scalar_prefetch=0,
            grid=grid,
            in_specs=[
                pl.BlockSpec((tm, K), lambda i, j: (i, 0)),   # x row tile
                pl.BlockSpec((K, R), lambda i, j: (0, 0)),    # Wa (resident)
                pl.BlockSpec((R, tn), lambda i, j: (0, j)),   # Wb column tile
            ],
            out_specs=pl.BlockSpec((tm, tn), lambda i, j: (i, j)),
            scratch_shapes=[pltpu.VMEM((tm, R), wa.dtype)],   # bf16 intermediate
        ),
        compiler_params=pltpu.CompilerParams(
            dimension_semantics=("parallel", "arbitrary"),
            vmem_limit_bytes=int(vmem_limit),
        ),
        cost_estimate=cost,
    )(x2, wa, wb)

    return y.reshape(orig_shape[:-1] + (N,))


def lora_ref(x, wa, wb, out_dtype=None):
    """Pure-JAX reference mirroring the kernel's bf16-operand / f32-accum path."""
    out_dtype = x.dtype if out_dtype is None else out_dtype
    t = jnp.dot(x.astype(wa.dtype), wa, preferred_element_type=jnp.float32)
    y = jnp.dot(t.astype(wb.dtype), wb, preferred_element_type=jnp.float32)
    return y.astype(out_dtype)


def init_lora_params(key, in_features, out_features, rank):
    # Mirrors the PyTorch __init__:
    #   A.weight (rank, in_features) ~ Normal(0, 0.02)
    #   B.weight (out_features, rank) = 0
    a_weight = 0.02 * jax.random.normal(key, (rank, in_features), dtype=jnp.float32)
    b_weight = jnp.zeros((out_features, rank), dtype=jnp.float32)
    return a_weight, b_weight


if __name__ == "__main__":
    in_features, out_features, rank = 32, 32, 4
    batch = 16

    key = jax.random.PRNGKey(0)
    k_x, k_a, k_b = jax.random.split(key, 3)

    x = jax.random.normal(k_x, (batch, in_features), dtype=jnp.float32)
    a_weight, b_weight = init_lora_params(k_a, in_features, out_features, rank)

    # One-time weight prep (transpose + bf16 cast + rank pad to 8 sublanes).
    wa, wb = prepare_lora_weights(a_weight, b_weight)

    # Case 1: module init (B == 0) -> output is exactly zero.
    y = lora_forward(x, wa, wb)
    jax.block_until_ready(y)
    assert y.shape == (batch, out_features)
    assert jnp.allclose(y, jnp.zeros_like(y)), "mismatch vs reference (zero-B case)"

    # Case 2: non-zero B weight, compare against a reference with the same
    # bf16-operand / f32-accumulation numerics.
    b_weight_nz = 0.02 * jax.random.normal(k_b, (out_features, rank), dtype=jnp.float32)
    wa2, wb2 = prepare_lora_weights(a_weight, b_weight_nz)
    y2 = lora_forward(x, wa2, wb2)
    jax.block_until_ready(y2)
    y2_ref = lora_ref(x, wa2, wb2)
    assert jnp.allclose(y2, y2_ref, atol=1e-4, rtol=1e-4), "mismatch (nonzero-B, bf16 ref)"

    # Sanity check against pure-f32 math with a bf16-appropriate tolerance.
    y2_f32 = (x @ a_weight.T) @ b_weight_nz.T
    assert jnp.allclose(y2, y2_f32, atol=2e-3, rtol=2e-2), "mismatch (nonzero-B, f32 ref)"

    # Ragged-M exercise (odd row count -> masked edge tile, no wrapper padding).
    x3 = jax.random.normal(k_x, (37, in_features), dtype=jnp.float32)
    y3 = lora_forward(x3, wa2, wb2)
    jax.block_until_ready(y3)
    y3_ref = lora_ref(x3, wa2, wb2)
    assert y3.shape == (37, out_features)
    assert jnp.allclose(y3, y3_ref, atol=1e-4, rtol=1e-4), "mismatch (ragged-M case)"

    # 3-D input (leading dims merged inside the wrapper).
    x4 = jax.random.normal(k_x, (2, 8, in_features), dtype=jnp.float32)
    y4 = lora_forward(x4, wa2, wb2)
    jax.block_until_ready(y4)
    assert y4.shape == (2, 8, out_features)
    assert jnp.allclose(y4.reshape(16, -1), lora_ref(x4.reshape(16, -1), wa2, wb2),
                        atol=1e-4, rtol=1e-4), "mismatch (3-D input case)"

    print("KERNEL_OK")
</pallas_src>

<mosaic_0001>
module attributes {stable_mosaic.version = 11 : i64} {
  func.func @lora_kernel(%arg0: i32, %arg1: i32, %arg2: memref<8x32xf32, #tpu.memory_space<vmem>>, %arg3: memref<32x8xbf16, #tpu.memory_space<vmem>>, %arg4: memref<8x32xbf16, #tpu.memory_space<vmem>>, %arg5: memref<8x32xf32, #tpu.memory_space<vmem>>, %arg6: memref<8x8xbf16, #tpu.memory_space<vmem>>) attributes {dimension_semantics = [#tpu.dimension_semantics<parallel>, #tpu.dimension_semantics<arbitrary>], iteration_bounds = array<i64: 2, 1>, scalar_prefetch = 0 : i64, scratch_operands = 1 : i64, tpu.core_type = #tpu.core_type<tc>, window_params = [{transform_indices = @transform_0, window_bounds = array<i64: 8, 32>}, {pipeline_mode = #tpu.pipeline_mode<synchronous>, transform_indices = @transform_1, window_bounds = array<i64: 32, 8>}, {transform_indices = @transform_2, window_bounds = array<i64: 8, 32>}, {transform_indices = @transform_3, window_bounds = array<i64: 8, 32>}]} {
    %c0_i32 = arith.constant 0 : i32
    %0 = arith.cmpi eq, %arg1, %c0_i32 : i32
    %1 = arith.extui %0 : i1 to i32
    %c0_i32_0 = arith.constant 0 : i32
    %2 = arith.cmpi ne, %1, %c0_i32_0 : i32
    scf.if %2 {
      %c0_6 = arith.constant 0 : index
      %c0_7 = arith.constant 0 : index
      %7 = vector.load %arg2[%c0_6, %c0_7] : memref<8x32xf32, #tpu.memory_space<vmem>>, vector<8x32xf32>
      %8 = arith.truncf %7 : vector<8x32xf32> to vector<8x32xbf16>
      %c0_8 = arith.constant 0 : index
      %c0_9 = arith.constant 0 : index
      %9 = vector.load %arg3[%c0_8, %c0_9] : memref<32x8xbf16, #tpu.memory_space<vmem>>, vector<32x8xbf16>
      %cst_10 = arith.constant dense<0.000000e+00> : vector<8x8xf32>
      %10 = tpu.matmul %8, %9, %cst_10 {dimension_numbers = #tpu.dot_dimension_numbers<[1], [0], [0], [1], [0, 0, 1, 1], [], []>} : vector<8x32xbf16>, vector<32x8xbf16>, vector<8x8xf32> -> vector<8x8xf32>
      %11 = arith.truncf %10 : vector<8x8xf32> to vector<8x8xbf16>
      %c0_11 = arith.constant 0 : index
      %c0_12 = arith.constant 0 : index
      %12 = vector.load %arg6[%c0_11, %c0_12] : memref<8x8xbf16, #tpu.memory_space<vmem>>, vector<8x8xbf16>
      tpu.vector_store %arg6[%c0_11, %c0_12], %11 {strides = array<i32>} : memref<8x8xbf16, #tpu.memory_space<vmem>>, vector<8x8xbf16>,
    } else {
    }
    %c0 = arith.constant 0 : index
    %c0_1 = arith.constant 0 : index
    %3 = vector.load %arg6[%c0, %c0_1] : memref<8x8xbf16, #tpu.memory_space<vmem>>, vector<8x8xbf16>
    %c0_2 = arith.constant 0 : index
    %c0_3 = arith.constant 0 : index
    %4 = vector.load %arg4[%c0_2, %c0_3] : memref<8x32xbf16, #tpu.memory_space<vmem>>, vector<8x32xbf16>
    %cst = arith.constant dense<0.000000e+00> : vector<8x32xf32>
    %5 = tpu.matmul %3, %4, %cst {dimension_numbers = #tpu.dot_dimension_numbers<[1], [0], [0], [1], [0, 0, 1, 1], [], []>} : vector<8x8xbf16>, vector<8x32xbf16>, vector<8x32xf32> -> vector<8x32xf32>
    %c0_4 = arith.constant 0 : index
    %c0_5 = arith.constant 0 : index
    %6 = vector.load %arg5[%c0_4, %c0_5] : memref<8x32xf32, #tpu.memory_space<vmem>>, vector<8x32xf32>
    tpu.vector_store %arg5[%c0_4, %c0_5], %5 {strides = array<i32>} : memref<8x32xf32, #tpu.memory_space<vmem>>, vector<8x32xf32>,
    return
  }
  func.func @transform_0(%arg0: i32, %arg1: i32) -> (i32, i32) {
    %c0_i32 = arith.constant 0 : i32
    %c0_i32_0 = arith.constant 0 : i32
    return %arg0, %c0_i32 : i32, i32
  }
  func.func @transform_1(%arg0: i32, %arg1: i32) -> (i32, i32) {
    %c0_i32 = arith.constant 0 : i32
    %c0_i32_0 = arith.constant 0 : i32
    %c0_i32_1 = arith.constant 0 : i32
    return %c0_i32, %c0_i32_0 : i32, i32
  }
  func.func @transform_2(%arg0: i32, %arg1: i32) -> (i32, i32) {
    %c0_i32 = arith.constant 0 : i32
    %c0_i32_0 = arith.constant 0 : i32
    return %c0_i32, %arg1 : i32, i32
  }
  func.func @transform_3(%arg0: i32, %arg1: i32) -> (i32, i32) {
    %c0_i32 = arith.constant 0 : i32
    return %arg0, %arg1 : i32, i32
  }
}

</mosaic_0001>

<bundles_post_ra>
// kernel: tpu_custom_call.1
= control target key start
LH: loop header
LB: loop body
LE: loop exit
PB: predicated region body
PF: predicated region fallthrough
CT: control target
= control target key end

     0   :  { %8 = vsyncpa [#allocation4], 0  ;;  %s652_s0 = inlined_call_operand.vmem [shape: f32[16,32], index: 0, kind: input, shape index: {}]   ;;  %s653_s1 = inlined_call_operand.vmem [shape: bf16[32,8], index: 1, kind: input, shape index: {}]   ;;  %s654_s2 = inlined_call_operand.vmem [shape: bf16[8,32], index: 2, kind: input, shape index: {}]   ;;  %s655_s3 = inlined_call_operand.hbm [shape: f32[16,32], index: 3, kind: output, shape index: {}]  }
   0x1   :  { %10 = vsyncpa [#allocation4 + $0x1], 0  ;;  %s544_s12 = smov 0   ;;  %s546_s13 = smov 0  }
   0x2   :  { %s548_s14 = smov 0   ;;  %s550_s15 = smov 0  }
   0x3   :  { %s552_s16 = smov 0   ;;  %s554_s17 = smov 0  }
   0x4 LB: > { %s365_s18 = sadd.s32 4294967295, %s522_s17   ;;  %s366_s19 = sadd.s32 4294967294, %s522_s17   ;;  %s522_s17 = sphi %s554_s17, %s16_s17   ;;  %s518_s16 = sphi %s552_s16, %s662_s16   ;;  %s514_s15 = sphi %s550_s15, %s661_s15   ;;  %s510_s14 = sphi %s548_s14, %s660_s14   ;;  %s506_s13 = sphi %s546_s13, %s659_s13   ;;  %s502_s12 = sphi %s544_s12, %s658_s12  }
   0x5   : > { %s28_s20 = sadd.s32 1, %s518_s16  ;;  %s110_s21 = sadd.s32 1, %s510_s14 }
   0x6   : > { %p30_p0 = scmp.ge.s32.totalorder %s28_s20, 2  ;;  %p120_p1 = scmp.ne.s32.totalorder %s510_s14, %s506_s13 }
   0x7   : > { %p121_p2 = scmp.eq.s32.totalorder %s365_s18, 1  ;;  %p126_p3 = scmp.ne.s32.totalorder %s506_s13, %s502_s12 }
   0x8   : > { %s664_s20 = smov (%p30_p0, %s28_s20), 0  ;;  %p127_p5 = scmp.eq.s32.totalorder %s366_s19, 1 }
   0x9   : > { %p584_p4 = por %p121_p2, %p120_p1  ;;  %s105_s23 = ssub.s32 %s518_s16, %s664_s20 }
   0xa   : > { %p370_p6 = scmp.ge.s32.totalorder %s522_s17, 1  ;;  %p108_p7 = scmp.eq.s32.totalorder %s105_s23, 0 }
   0xb   : > { %p591_p8 = por %p127_p5, %p126_p3  ;;  %p162_p9 = scmp.lt.s32.totalorder %s522_s17, 3 }
   0xc   : > { %s597_s25 = scalar_select %p108_p7, %s510_s14, %s110_s21  }
   0xd   : > { %p163_p10 = pnand %p370_p6, %p162_p9 }
   0xe   : > { %p189_p11 = scmp.lt.s32.totalorder (!%p163_p10), %s514_s15, 1  ;;  %s186_s10 = sand.u32 (!%p163_p10), 1, %s506_s13  }
   0xf   : > { %166 = sbr.rel (%p163_p10) target bundleno = 298 (0x12a), region = 32  ;;  %s384_s11 = sshll.u32 (!%p163_p10), %s514_s15, 3 }
  0x10   : > { %s371_s18 = sshll.u32 (!%p163_p10), %s186_s10, 3  ;;  %s277_s23 = scalar_lea.hbm (!%p163_p10), %s655_s3, %s384_s11 }
  0x11   : > { %s188_s26 = scalar_lea.vmem (!%p163_p10), [#allocation3], %s371_s18  ;;  %s281_s28 = sshll.u32 (!%p163_p10), %s277_s23, 4  ;;  %s282_s28 = int_to_ptr.hbm [resolvable:$true] %s281_s28 }
  0x12   : > { %s279_s27 = sshll.u32 (!%p163_p10), %s188_s26, 4  ;;  %s266_s29 = scalar_lea.sflag (!%p163_p10), [#allocation4], %s186_s10  ;;  %s280_s27 = int_to_ptr.vmem [resolvable:$true] %s279_s27 }
  0x13   : > { %s464_s6 = scalar_lea.hbm (!%p163_p10), %s655_s3, 16 }
  0x14   : > { %v388_v0 = vld [vmem:[%s653_s1 + $0x8] sm:$0xff]  ;;  %v387_v1 = vld [vmem:[%s653_s1] sm:$0xff]  ;;  %s190_s30 = scalar_select %p189_p11, %s514_s15, 1  ;;  %vm220_vm0 = vcmask 261120   ;;  %vm246_vm1 = vcmask 1043456   ;;  %vm238_vm2 = vcmask 60416  }
  0x15   : > { %230 = vmatpush.bf16.msra.mxu0 %v388_v0  ;;  %v241_v4 = vld [vmem:[%s654_s2] sm:$0xf]  ;;  %vm242_vm3 = vcmask 64512  }
  0x16   : > { %s372_s4 = sshll.u32 %s190_s30, 3  ;;  %v248_v5 = vsel %vm246_vm1, %v241_v4, 0  ;;  %s458_s30 = sshra.s32 %s282_s28, 4  ;;  %s459_s30 = int_to_ptr.hbm [resolvable:$true] %s458_s30 }
  0x17   : > { %s192_s7 = scalar_lea.vmem %s652_s0, %s372_s4  ;;  %257 = vmatpush.bf16.msra.mxu1 %v248_v5  ;;  %s460_s4 = scalar_lea.hbm %s459_s30, 8 }
  0x18   : > { %v202_v2 = vld [vmem:[%s192_s7] sm:$0xff]  ;;  %p461_p12 = scmp.ne.s32.totalorder %s459_s30, %s460_s4  ;;  %p465_p1 = scmp.lt.s32.totalorder %s459_s30, %s655_s3 }
  0x19   : > { %231 = vmatpush.bf16.msra.mxu0 %v387_v1  ;;  %v203_v3 = vpack.c.bf16 %v202_v2, %v202_v2  ;;  %p466_p2 = scmp.lt.s32.totalorder %s464_s6, %s460_s4 }
  0x1a   : > { %p462_p13 = pnand %p461_p12, %p584_p4 }
  0x1b   : > { %p467_p3 = por %p466_p2, %p465_p1 }
  0x1c   : > { %381 = vmatmul.msk.bf16.vlgmr.msra.gmra.mxu0 %vm220_vm0, %v203_v3  ;;  %p463_p0 = pneg %p462_p13 }
  0x1e   : > { %p468_p5 = pnand %p467_p3, %p463_p0 }
  0x99   : > { %v233_v6 = vpop.f32.mrf.mxu0 }
  0x9a   : > { %v237_v7 = vpack.c.bf16 %v233_v6, %v233_v6 }
  0x9c   : > { %239 = vst.msk [vmem:[#allocation2] sm:$0xf] %vm238_vm2, %v237_v7 }
  0xa1   : > { %v235_v8 = vpop.f32.mrf.mxu0 }
  0xa3   : > { %v240_v9 = vld [vmem:[#allocation2] sm:$0xf] }
  0xa4   : > { %382 = vmatmul.msk.bf16.vlgmr.msra.gmra.mxu1 %vm242_vm3, %v240_v9 }
 0x121   : > { %v259_v10 = vpop.f32.mrf.mxu1 }
 0x122   : > { %264 = vst.msk [vmem:[%s188_s26] sm:$0xff] %vm220_vm0, %v259_v10 }
 0x123   : > { %471 = shalt.err (!%p468_p5)
}
 0x124   : > { %389 = dma.vmem_to_hbm [thread:$0]  (%p584_p4), %s280_s27, 128, %s282_s28, %s266_s29  }
 0x129   : > { %v261_v11 = vpop.f32.mrf.mxu1 }
 0x12a PF: > { %p395_p6 = scmp.ge.s32.totalorder %s522_s17, 2  ;;  %s293_s9 = sand.u32 1, %s502_s12  }
 0x12b   : > { %s294_s10 = scalar_lea.sflag [#allocation4], %s293_s9 }
 0x12c   : > { %p392_p7 = pnand %p395_p6, %p591_p8 }
 0x12e   : > { %p393_p9 = pneg %p392_p7 }
 0x130   : > { %497 = dma.done.wait (%p393_p9), %s294_s10, 128  }
 0x131   : > { %499 = vsyncadd (%p393_p9), %s294_s10, 4294967168  ;;  %s16_s17 = sadd.s32 1, %s522_s17   ;;  %s658_s12 = smov %s506_s13 }
 0x132   : > { %p13_p10 = scmp.ge.s32.totalorder %s16_s17, 4   ;;  %s659_s13 = smov %s510_s14 }
 0x133   : > { %s660_s14 = smov %s597_s25  ;;  %s661_s15 = smov %s518_s16 }
 0x134   : > { %s662_s16 = smov %s664_s20  ;;  %15 = sbr.rel (!%p13_p10) target bundleno = 4 (0x4), region = 74 }
 0x139   :  { %300 = vsyncpa [#allocation4], 1 }
 0x13a   :  { %302 = vsyncpa [#allocation4 + $0x1], 1 }

</bundles_post_ra>
